<compile_context>
chip_gen: v6e
topology: v6e:2x2x1
jax: 0.10.0
libtpu: 0.0.40
codegen_flags: <defaults>
</compile_context>

<pallas_src>
import functools

import jax
import jax.numpy as jnp
from jax import lax
from jax.experimental import pallas as pl
from jax.experimental.pallas import tpu as pltpu

_MIB = 1024 * 1024


# ----------------------------------------------------------------------------
# Core math (one row-chunk of S rows, VPU/XLU/EUP only, f32 accumulation)
# ----------------------------------------------------------------------------
def _attend(q, k, v, inv_temperature):
    """q: (S, D), k/v: (S, L, D) in streaming dtype -> (out (S,D), attn (S,L)) f32."""
    # scores[s, l] = (sum_d q[s, d] * k[s, l, d]) * (1 / temperature)
    # Broadcast-multiply in the native dtype, accumulate the lane reduce in f32.
    scores = jnp.sum(q[:, None, :] * k, axis=-1, dtype=jnp.float32)      # (S, L)
    scores = scores * inv_temperature

    # Row softmax over L (dim=2 of the PyTorch (B, 1, L) layout).
    m = jnp.max(scores, axis=-1, keepdims=True)
    e = jnp.exp(scores - m)
    denom = jnp.sum(e, axis=-1, keepdims=True)
    # EUP approximate reciprocal + one Newton refinement: the expensive part
    # runs on the idle EUP slot, the 3 tiny VALU ops restore f32 accuracy.
    r = pl.reciprocal(denom, approx=True)
    r = r * (2.0 - denom * r)
    attn = e * r                                                          # (S, L)

    # dropout: identity (eval mode)

    # out[s, d] = sum_l attn[s, l] * v[s, l, d]  (narrow multiply, f32 reduce)
    out = jnp.sum(attn.astype(v.dtype)[:, :, None] * v, axis=1,
                  dtype=jnp.float32)                                      # (S, D)
    return out, attn


def _sdpa_body(q_ref, k_ref, v_ref, out_ref, attn_ref, inv_temperature, sub_rows):
    """Process the (TB, ...) tile in row chunks of `sub_rows` to bound temporaries."""
    tb = out_ref.shape[0]
    num_full = tb // sub_rows
    rem = tb - num_full * sub_rows

    def _chunk(row, nrows):
        out, attn = _attend(q_ref[pl.ds(row, nrows), :],
                            k_ref[pl.ds(row, nrows), :, :],
                            v_ref[pl.ds(row, nrows), :, :],
                            inv_temperature)
        out_ref[pl.ds(row, nrows), :] = out.astype(out_ref.dtype)
        if attn_ref is not None:
            attn_ref[pl.ds(row, nrows), :] = attn.astype(attn_ref.dtype)

    if num_full <= 1 and rem == 0:
        _chunk(0, tb)                      # single static full-tile chunk
    else:
        if num_full > 0:
            def body(i, carry):
                _chunk(pl.multiple_of(i * sub_rows, sub_rows), sub_rows)
                return carry
            lax.fori_loop(0, num_full, body, 0)
        if rem > 0:
            _chunk(num_full * sub_rows, rem)


def _sdpa_kernel_attn(q_ref, k_ref, v_ref, out_ref, attn_ref, *,
                      inv_temperature, sub_rows):
    _sdpa_body(q_ref, k_ref, v_ref, out_ref, attn_ref, inv_temperature, sub_rows)


def _sdpa_kernel_noattn(q_ref, k_ref, v_ref, out_ref, *,
                        inv_temperature, sub_rows):
    _sdpa_body(q_ref, k_ref, v_ref, out_ref, None, inv_temperature, sub_rows)


# ----------------------------------------------------------------------------
# Tiling / budget selection (generation-aware)
# ----------------------------------------------------------------------------
def _vmem_capacity_bytes():
    try:
        cap = int(getattr(pltpu.get_tpu_info(), "vmem_capacity_bytes", 0))
        if cap > 0:
            return cap
    except Exception:
        pass
    return 64 * _MIB  # conservative fallback: v7x has the smallest per-core VMEM


def _pick_params(B, L, D, in_dtype, out_dtype, block_b, sub_rows):
    in_sz = jnp.dtype(in_dtype).itemsize
    out_sz = jnp.dtype(out_dtype).itemsize
    # Sublane multiple of the streamed dtype: 8 (f32), 16 (bf16), 32 (int8/fp8).
    sublane = max(8, 32 // max(1, min(in_sz, out_sz)))

    # Generation-aware VMEM: ~3/4 of physical per-core VMEM as the kernel limit
    # (96 MiB on v5e/v6e's 128 MiB, 48 MiB on v7x's 64 MiB).
    vmem_cap = _vmem_capacity_bytes()
    vmem_limit = max(32 * _MIB, min(vmem_cap * 3 // 4, vmem_cap - 8 * _MIB))

    # Bytes streamed HBM<->VMEM per batch row (q, k, v in; out, attn back),
    # double-buffered by the BlockSpec pipeline.
    stream_per_row = (2 * L * D + D) * in_sz + (D + L) * out_sz

    # Reserve room for the in-kernel f32 intermediates of one row sub-chunk
    # (broadcast products + f32 accumulators), which do NOT scale with TB.
    temp_per_row = 4 * L * D * 4
    temp_reserve = 8 * _MIB
    if sub_rows is None:
        sub_rows = temp_reserve // max(temp_per_row, 1)
        sub_rows = max(sublane, min(256, (sub_rows // sublane) * sublane))
    sub_rows = int(sub_rows)

    if block_b is None:
        # No fixed row cap: take the biggest TB the double-buffered stream
        # budget allows (many MiB per step >> the ~0.35us step-overhead floor).
        stream_budget = max(4 * _MIB, vmem_limit - temp_reserve)
        tb = stream_budget // max(2 * stream_per_row, 1)
    else:
        tb = int(block_b)

    tb = max(tb, sublane)
    if B > 2 * sublane:
        # Keep >= 2 grid steps so the "parallel" axis can shard across v7x's
        # two TensorCores; a single extra step is harmless on v5e/v6e.
        tb = min(tb, -(-B // 2))
    if tb >= B:
        tb = B                                   # full-extent block is always legal
    elif tb > sub_rows:
        tb = (tb // sub_rows) * sub_rows         # whole sub-chunks per tile
    else:
        tb = max(sublane, (tb // sublane) * sublane)

    sub_rows = min(sub_rows, tb)
    return int(tb), int(sub_rows), int(vmem_limit)


# ----------------------------------------------------------------------------
# Public wrapper
# ----------------------------------------------------------------------------
def scaled_dot_product_attention(q, k, v, temperature, *, return_attn=True,
                                 block_b=None, sub_rows=None):
    """q: (B, D), k/v: (B, L, D) -> (out (B,1,D), attn (B,1,L)) like PyTorch."""
    B, D = q.shape
    Bk, L, Dk = k.shape
    assert Bk == B and Dk == D and v.shape == (B, L, D)

    out_dtype = q.dtype   # NOTE: returned attn is also emitted in q.dtype
    tb, sub, vmem_limit = _pick_params(B, L, D, k.dtype, out_dtype,
                                       block_b, sub_rows)
    grid = (pl.cdiv(B, tb),)

    in_specs = [
        pl.BlockSpec((tb, D), lambda i: (i, 0)),
        pl.BlockSpec((tb, L, D), lambda i: (i, 0, 0)),
        pl.BlockSpec((tb, L, D), lambda i: (i, 0, 0)),
    ]
    compiler_params = pltpu.CompilerParams(
        dimension_semantics=("parallel",),   # megacore / v7x dual-TC sharding
        vmem_limit_bytes=vmem_limit,
    )
    inv_t = 1.0 / float(temperature)

    if return_attn:
        kernel = functools.partial(_sdpa_kernel_attn,
                                   inv_temperature=inv_t, sub_rows=sub)
        out2, attn2 = pl.pallas_call(
            kernel,
            out_shape=(jax.ShapeDtypeStruct((B, D), out_dtype),
                       jax.ShapeDtypeStruct((B, L), out_dtype)),
            grid_spec=pltpu.PrefetchScalarGridSpec(
                num_scalar_prefetch=0,
                grid=grid,
                in_specs=in_specs,
                out_specs=[pl.BlockSpec((tb, D), lambda i: (i, 0)),
                           pl.BlockSpec((tb, L), lambda i: (i, 0))],
            ),
            compiler_params=compiler_params,
        )(q, k, v)
        return out2.reshape(B, 1, D), attn2.reshape(B, 1, L)

    kernel = functools.partial(_sdpa_kernel_noattn,
                               inv_temperature=inv_t, sub_rows=sub)
    out2 = pl.pallas_call(
        kernel,
        out_shape=jax.ShapeDtypeStruct((B, D), out_dtype),
        grid_spec=pltpu.PrefetchScalarGridSpec(
            num_scalar_prefetch=0,
            grid=grid,
            in_specs=in_specs,
            out_specs=pl.BlockSpec((tb, D), lambda i: (i, 0)),
        ),
        compiler_params=compiler_params,
    )(q, k, v)
    return out2.reshape(B, 1, D), None


def _reference(q, k, v, temperature):
    # Pure-JAX reference mirroring the PyTorch code exactly (eval mode).
    attn = jnp.matmul(q[:, None, :], jnp.swapaxes(k, 1, 2)) / temperature
    attn = jax.nn.softmax(attn, axis=2)
    out = jnp.matmul(attn, v)
    return out, attn


if __name__ == "__main__":
    L, D = 8, 32
    temperature = float(D) ** 0.5

    keys = jax.random.split(jax.random.PRNGKey(0), 6)

    # --- small shape matching the module (B=2) ------------------------------
    B = 2
    q = jax.random.normal(keys[0], (B, D), dtype=jnp.float32)
    k = jax.random.normal(keys[1], (B, L, D), dtype=jnp.float32)
    v = jax.random.normal(keys[2], (B, L, D), dtype=jnp.float32)

    out, attn = scaled_dot_product_attention(q, k, v, temperature)
    jax.block_until_ready((out, attn))

    out_ref, attn_ref = _reference(q, k, v, temperature)
    assert out.shape == (B, 1, D) and attn.shape == (B, 1, L)
    assert jnp.allclose(out, out_ref, atol=1e-5, rtol=1e-5)
    assert jnp.allclose(attn, attn_ref, atol=1e-5, rtol=1e-5)

    # attn-less variant (skips the (B, L) attention writeback entirely).
    out_only, no_attn = scaled_dot_product_attention(
        q, k, v, temperature, return_attn=False)
    jax.block_until_ready(out_only)
    assert no_attn is None
    assert jnp.allclose(out_only, out_ref, atol=1e-5, rtol=1e-5)

    # --- tiled path: grid > 1, in-kernel row-chunk loop, padded tail block ---
    B2 = 40
    q2 = jax.random.normal(keys[3], (B2, D), dtype=jnp.float32)
    k2 = jax.random.normal(keys[4], (B2, L, D), dtype=jnp.float32)
    v2 = jax.random.normal(keys[5], (B2, L, D), dtype=jnp.float32)
    out2, attn2 = scaled_dot_product_attention(
        q2, k2, v2, temperature, block_b=16, sub_rows=8)
    jax.block_until_ready((out2, attn2))
    out2_ref, attn2_ref = _reference(q2, k2, v2, temperature)
    assert jnp.allclose(out2, out2_ref, atol=1e-5, rtol=1e-5)
    assert jnp.allclose(attn2, attn2_ref, atol=1e-5, rtol=1e-5)

    print("KERNEL_OK")
</pallas_src>

<mosaic_0001>
module attributes {stable_mosaic.version = 11 : i64} {
  func.func @_sdpa_kernel_attn(%arg0: i32, %arg1: memref<2x32xf32, #tpu.memory_space<vmem>>, %arg2: memref<2x8x32xf32, #tpu.memory_space<vmem>>, %arg3: memref<2x8x32xf32, #tpu.memory_space<vmem>>, %arg4: memref<2x32xf32, #tpu.memory_space<vmem>>, %arg5: memref<2x8xf32, #tpu.memory_space<vmem>>) attributes {dimension_semantics = [#tpu.dimension_semantics<parallel>], iteration_bounds = array<i64: 1>, scalar_prefetch = 0 : i64, scratch_operands = 0 : i64, tpu.core_type = #tpu.core_type<tc>, window_params = [{transform_indices = @transform_0, window_bounds = array<i64: 2, 32>}, {transform_indices = @transform_1, window_bounds = array<i64: 2, 8, 32>}, {transform_indices = @transform_2, window_bounds = array<i64: 2, 8, 32>}, {transform_indices = @transform_3, window_bounds = array<i64: 2, 32>}, {transform_indices = @transform_4, window_bounds = array<i64: 2, 8>}]} {
    %c0 = arith.constant 0 : index
    %c0_0 = arith.constant 0 : index
    %0 = vector.load %arg1[%c0, %c0_0] : memref<2x32xf32, #tpu.memory_space<vmem>>, vector<2x32xf32>
    %c0_1 = arith.constant 0 : index
    %c0_2 = arith.constant 0 : index
    %c0_3 = arith.constant 0 : index
    %1 = vector.load %arg2[%c0_1, %c0_2, %c0_3] : memref<2x8x32xf32, #tpu.memory_space<vmem>>, vector<2x8x32xf32>
    %c0_4 = arith.constant 0 : index
    %c0_5 = arith.constant 0 : index
    %c0_6 = arith.constant 0 : index
    %2 = vector.load %arg3[%c0_4, %c0_5, %c0_6] : memref<2x8x32xf32, #tpu.memory_space<vmem>>, vector<2x8x32xf32>
    %3 = vector.shape_cast %0 : vector<2x32xf32> to vector<2x1x32xf32>
    %4 = vector.broadcast %3 : vector<2x1x32xf32> to vector<2x8x32xf32>
    %5 = arith.mulf %4, %1 : vector<2x8x32xf32>
    %cst = arith.constant dense<0.000000e+00> : vector<2x8xf32>
    %6 = vector.multi_reduction <add>, %5, %cst [2] : vector<2x8x32xf32> to vector<2x8xf32>
    %cst_7 = arith.constant 0.176776692 : f32
    %7 = vector.broadcast %cst_7 : f32 to vector<2x8xf32>
    %8 = arith.mulf %6, %7 : vector<2x8xf32>
    %cst_8 = arith.constant dense<0xFF800000> : vector<2xf32>
    %9 = vector.multi_reduction <maximumf>, %8, %cst_8 [1] : vector<2x8xf32> to vector<2xf32>
    %10 = vector.shape_cast %9 : vector<2xf32> to vector<2x1xf32>
    %11 = vector.broadcast %10 : vector<2x1xf32> to vector<2x8xf32>
    %12 = arith.subf %8, %11 : vector<2x8xf32>
    %13 = math.exp %12 : vector<2x8xf32>
    %cst_9 = arith.constant dense<0.000000e+00> : vector<2xf32>
    %14 = vector.multi_reduction <add>, %13, %cst_9 [1] : vector<2x8xf32> to vector<2xf32>
    %15 = vector.shape_cast %14 : vector<2xf32> to vector<2x1xf32>
    %16 = tpu.reciprocal %15 {approx = true} : vector<2x1xf32> -> vector<2x1xf32>
    %17 = arith.mulf %15, %16 : vector<2x1xf32>
    %cst_10 = arith.constant 2.000000e+00 : f32
    %18 = vector.broadcast %cst_10 : f32 to vector<2x1xf32>
    %19 = arith.subf %18, %17 : vector<2x1xf32>
    %20 = arith.mulf %16, %19 : vector<2x1xf32>
    %21 = vector.broadcast %20 : vector<2x1xf32> to vector<2x8xf32>
    %22 = arith.mulf %13, %21 : vector<2x8xf32>
    %23 = vector.shape_cast %22 : vector<2x8xf32> to vector<2x8x1xf32>
    %24 = vector.broadcast %23 : vector<2x8x1xf32> to vector<2x8x32xf32>
    %25 = arith.mulf %24, %2 : vector<2x8x32xf32>
    %cst_11 = arith.constant dense<0.000000e+00> : vector<2x32xf32>
    %26 = vector.multi_reduction <add>, %25, %cst_11 [1] : vector<2x8x32xf32> to vector<2x32xf32>
    %c0_12 = arith.constant 0 : index
    %c0_13 = arith.constant 0 : index
    %27 = vector.load %arg4[%c0_12, %c0_13] : memref<2x32xf32, #tpu.memory_space<vmem>>, vector<2x32xf32>
    tpu.vector_store %arg4[%c0_12, %c0_13], %26 {strides = array<i32>} : memref<2x32xf32, #tpu.memory_space<vmem>>, vector<2x32xf32>,
    %c0_14 = arith.constant 0 : index
    %c0_15 = arith.constant 0 : index
    %28 = vector.load %arg5[%c0_14, %c0_15] : memref<2x8xf32, #tpu.memory_space<vmem>>, vector<2x8xf32>
    tpu.vector_store %arg5[%c0_14, %c0_15], %22 {strides = array<i32>} : memref<2x8xf32, #tpu.memory_space<vmem>>, vector<2x8xf32>,
    return
  }
  func.func @transform_0(%arg0: i32) -> (i32, i32) {
    %c0_i32 = arith.constant 0 : i32
    %c0_i32_0 = arith.constant 0 : i32
    return %arg0, %c0_i32 : i32, i32
  }
  func.func @transform_1(%arg0: i32) -> (i32, i32, i32) {
    %c0_i32 = arith.constant 0 : i32
    %c0_i32_0 = arith.constant 0 : i32
    %c0_i32_1 = arith.constant 0 : i32
    return %arg0, %c0_i32, %c0_i32_0 : i32, i32, i32
  }
  func.func @transform_2(%arg0: i32) -> (i32, i32, i32) {
    %c0_i32 = arith.constant 0 : i32
    %c0_i32_0 = arith.constant 0 : i32
    %c0_i32_1 = arith.constant 0 : i32
    return %arg0, %c0_i32, %c0_i32_0 : i32, i32, i32
  }
  func.func @transform_3(%arg0: i32) -> (i32, i32) {
    %c0_i32 = arith.constant 0 : i32
    %c0_i32_0 = arith.constant 0 : i32
    return %arg0, %c0_i32 : i32, i32
  }
  func.func @transform_4(%arg0: i32) -> (i32, i32) {
    %c0_i32 = arith.constant 0 : i32
    %c0_i32_0 = arith.constant 0 : i32
    return %arg0, %c0_i32 : i32, i32
  }
}

</mosaic_0001>

<bundles_post_ra>
// kernel: tpu_custom_call.1
= control target key start
LH: loop header
LB: loop body
LE: loop exit
PB: predicated region body
PF: predicated region fallthrough
CT: control target
= control target key end

     0   :  { %10 = vsyncpa [#allocation3], 0  ;;  %s453_s0 = inlined_call_operand.hbm [shape: f32[2,32], index: 0, kind: input, shape index: {}]   ;;  %s454_s1 = inlined_call_operand.hbm [shape: f32[2,8,32], index: 1, kind: input, shape index: {}]   ;;  %s455_s2 = inlined_call_operand.hbm [shape: f32[2,8,32], index: 2, kind: input, shape index: {}]   ;;  %s456_s3 = inlined_call_operand.hbm [shape: f32[2,32], index: 3, kind: output, shape index: {0}]   ;;  %s457_s4 = inlined_call_operand.hbm [shape: f32[2,8], index: 4, kind: output, shape index: {1}]  }
   0x1   :  { %11 = vsyncpa [#allocation6], 0 }
   0x2   :  { %12 = vsyncpa [#allocation4], 0 }
   0x3   :  { %13 = vsyncpa [#allocation10], 0  ;;  %s379_s15 = smov [#allocation5]  }
   0x4   :  { %s29_s16 = sshll.u32 %s379_s15, 4  ;;  %s30_s16 = int_to_ptr.vmem [resolvable:$true] %s29_s16 }
   0x5   :  { %s279_s17 = scalar_lea.vmem %s30_s16, 256  ;;  %p284_p1 = scmp.lt.s32.totalorder %s30_s16, %s30_s16 }
   0x6   :  { %p280_p0 = scmp.ne.s32.totalorder %s30_s16, %s279_s17  ;;  %p285_p2 = scmp.lt.s32.totalorder %s279_s17, %s279_s17 }
   0x8   :  { %p286_p3 = por %p285_p2, %p284_p1 }
   0xa   :  { %p287_p4 = pnand %p286_p3, %p280_p0 }
   0xc   :  { %290 = shalt.err (!%p287_p4)
}
   0xd   :  { %s380_s18 = smov 128   ;;  %s381_s19 = smov 8  }
   0xe   :  { %35 = dma.hbm_to_vmem [thread:$0]  %s454_s1, 256, %s30_s16, [#allocation6], %s380_s18, %s380_s18, %s381_s19  }
   0xf   :  { %s382_s22 = smov [#allocation2]   ;;  %s383_s24 = smov [#allocation7]  }
  0x10   :  { %s20_s23 = sshll.u32 %s382_s22, 4  ;;  %s41_s25 = sshll.u32 %s383_s24, 4  ;;  %s21_s23 = int_to_ptr.vmem [resolvable:$true] %s20_s23  ;;  %s42_s25 = int_to_ptr.vmem [resolvable:$true] %s41_s25 }
  0x11   :  { %s299_s26 = scalar_lea.vmem %s21_s23, 32  ;;  %p304_p6 = scmp.lt.s32.totalorder %s21_s23, %s21_s23 }
  0x12   :  { %p300_p5 = scmp.ne.s32.totalorder %s21_s23, %s299_s26  ;;  %p305_p7 = scmp.lt.s32.totalorder %s299_s26, %s299_s26 }
  0x14   :  { %p306_p8 = por %p305_p7, %p304_p6 }
  0x16   :  { %p307_p9 = pnand %p306_p8, %p300_p5 }
  0x18   :  { %310 = shalt.err (!%p307_p9)
}
  0x19   :  { %23 = dma.hbm_to_vmem [thread:$0]  %s453_s0, 32, %s21_s23, [#allocation3]  }
  0x1a   :  { %s319_s29 = scalar_lea.vmem %s42_s25, 256  ;;  %p324_p11 = scmp.lt.s32.totalorder %s42_s25, %s42_s25 }
  0x1b   :  { %p320_p10 = scmp.ne.s32.totalorder %s42_s25, %s319_s29  ;;  %p325_p12 = scmp.lt.s32.totalorder %s319_s29, %s319_s29 }
  0x1d   :  { %p326_p13 = por %p325_p12, %p324_p11 }
  0x1f   :  { %p327_p0 = pnand %p326_p13, %p320_p10 }
  0x21   :  { %330 = shalt.err (!%p327_p0)
}
  0x22   :  { %47 = dma.hbm_to_vmem [thread:$0]  %s455_s2, 256, %s42_s25, [#allocation6], %s380_s18, %s380_s18, %s381_s19  }
  0x23   :  { %371 = dma.done.wait [#allocation3], 32  }
  0x24   :  { %372 = vsyncadd [#allocation3], 4294967264 }
  0x25   :  { %373 = dma.done.wait [#allocation6], 512  }
  0x26   :  { %374 = vsyncadd [#allocation6], 4294966784  ;;  %v74_v0 = vlaneseq  ;;  %v384_v1 = vmov 1966171168   ;;  %v58_v12 = vld [vmem:[#allocation5] sm:$0xff]  ;;  %vm97_vm0 = vcmask 261120  }
  0x27   :  { %v72_v2 = vunpack.c.l.s4 %v384_v1  ;;  %v253_v9 = vld.sshfl [vmem:[#allocation2] sm:$0x11 pattern:$0x75316420]  ;;  %v59_v15 = vld [vmem:[#allocation5 + $0x8] sm:$0xff]  ;;  %vm118_vm1 = vcmask 1041409  }
  0x28   :  { %v422_v3 = vshrl.u32 %v74_v0, 7  ;;  %v109_v4 = vand.u32 127, %v74_v0  ;;  %v70_v11 = vcombine.high %v253_v9, %v253_v9  ;;  %vm121_vm2 = vcmask 58368   ;;  %v60_v55 = vld [vmem:[#allocation7] sm:$0xff]  ;;  %v61_v58 = vld [vmem:[#allocation7 + $0x8] sm:$0xff]  ;;  %s386_s0 = smov [#allocation9]  }
  0x29   :  { %v73_v5 = vunpack.c.0.s8 %v72_v2  ;;  %v385_v29 = vmov 0   ;;  %s239_s2 = sshll.u32 %s386_s0, 4  ;;  %s240_s2 = int_to_ptr.vmem [resolvable:$true] %s239_s2 }
  0x2a   :  { %v425_v6 = vsub.s32 %v109_v4, %v422_v3  ;;  %v87_v8 = vsub.s32 0, %v422_v3  ;;  %264 = vset.pattern.permute.xlu0 %v385_v29  ;;  %263 = vset.pattern.permute.xlu1 %v385_v29  ;;  %v132_v30 = vsub.s32 1, %v422_v3  ;;  %s331_s5 = scalar_lea.vmem %s240_s2, 32  ;;  %p336_p2 = scmp.lt.s32.totalorder %s240_s2, %s240_s2 }
  0x2b   :  { %v76_v7 = vsub.s32 %v73_v5, %v422_v3  ;;  %p332_p1 = scmp.ne.s32.totalorder %s240_s2, %s331_s5  ;;  %p337_p3 = scmp.lt.s32.totalorder %s331_s5, %s331_s5 }
  0x2d   :  { %v77_v10 = vrot.slane %v253_v9, %v76_v7  ;;  %v84_v14 = vrot.slane %v70_v11, %v76_v7  ;;  %p338_p4 = por %p337_p3, %p336_p2 }
  0x2f   :  { %v88_v13 = vrot.slane %v77_v10, %v87_v8  ;;  %v92_v17 = vrot.slane %v84_v14, %v87_v8  ;;  %p339_p5 = pnand %p338_p4, %p332_p1 }
  0x31   :  { %v95_v16 = vmul.f32 %v88_v13, %v58_v12  ;;  %v96_v19 = vmul.f32 %v92_v17, %v59_v15 }
  0x33   :  { %v98_v18 = vsel %vm97_vm0, %v95_v16, 0.0  ;;  %v101_v20 = vsel %vm97_vm0, %v96_v19, 0.0 }
  0x34   :  { %99 = vadd.xlane.f32.xlu0 %v98_v18 }
  0x38   :  { %102 = vadd.xlane.f32.xlu0 %v101_v20 }
  0xbd   :  { %v100_v21 = vpop.xlane.xlu0 %99 }
  0xbe   :  { %v104_v22 = vmul.f32 0.17677669, %v100_v21 }
  0xc0   :  { %v113_v25 = vrot.slane %v104_v22, %v425_v6 }
  0xc1   :  { %v103_v23 = vpop.xlane.xlu0 %102 }
  0xc2   :  { %v105_v24 = vmul.f32 0.17677669, %v103_v23 }
  0xc4   :  { %v117_v26 = vrot.slane %v105_v24, %v425_v6 }
  0xc6   :  { %v119_v27 = vsel %vm118_vm1, %v117_v26, %v113_v25 }
  0xc7   :  { %v122_v28 = vsel %vm121_vm2, %v119_v27, -inf }
  0xc8   :  { %123 = vmax.xlane.f32.xlu1 %v122_v28 }
 0x151   :  { %v124_v31 = vpop.xlane.xlu1 %123 }
 0x152   :  { %v129_v32 = vrot.slane %v124_v31, %v87_v8  ;;  %v133_v33 = vrot.slane %v124_v31, %v132_v30 }
 0x154   :  { %v136_v34 = vsub.f32 %v104_v22, %v129_v32  ;;  %v137_v35 = vsub.f32 %v105_v24, %v133_v33 }
 0x156   :  { %v138_v36 = vmul.f32 1.442695, %v136_v34  ;;  %v140_v37 = vmul.f32 1.442695, %v137_v35 }
 0x158   :  { %265 = vpow2.f32 %v138_v36 }
 0x159   :  { %267 = vpow2.f32 %v140_v37 }
 0x165   :  { %v266_v38 = vpop.eup %265 }
 0x166   :  { %v268_v39 = vpop.eup %267  ;;  %145 = vperm.xlu1 %263, %v266_v38  }
 0x167   :  { %148 = vperm.xlu0 %264, %v268_v39  }
 0x1e1   :  { %v146_v40 = vpop.permute.xlu1 %145 }
 0x1e2   :  { %v149_v41 = vpop.permute.xlu0 %148  ;;  %v153_v42 = vrot.slane %v146_v40, %v425_v6 }
 0x1e3   :  { %v157_v43 = vrot.slane %v149_v41, %v425_v6 }
 0x1e5   :  { %v158_v44 = vsel %vm118_vm1, %v157_v43, %v153_v42 }
 0x1e6   :  { %v160_v45 = vsel %vm121_vm2, %v158_v44, 0.0 }
 0x1e7   :  { %161 = vadd.xlane.f32.xlu1 %v160_v45 }
 0x270   :  { %v162_v46 = vpop.xlane.xlu1 %161 }
 0x271   :  { %269 = vrcp.f32 %v162_v46 }
 0x27e   :  { %v270_v47 = vpop.eup %269 }
 0x27f   :  { %v164_v48 = vmul.f32 %v270_v47, %v162_v46 }
 0x281   :  { %v165_v49 = vsub.f32 2.0, %v164_v48 }
 0x283   :  { %v166_v50 = vmul.f32 %v270_v47, %v165_v49 }
 0x285   :  { %v171_v51 = vrot.slane %v166_v50, %v87_v8  ;;  %v175_v52 = vrot.slane %v166_v50, %v132_v30 }
 0x287   :  { %v178_v53 = vmul.f32 %v266_v38, %v171_v51  ;;  %v179_v54 = vmul.f32 %v268_v39, %v175_v52 }
 0x289   :  { %182 = vperm.xlu0 %264, %v178_v53  }
 0x28d   :  { %187 = vperm.xlu0 %264, %v179_v54  }
 0x304   :  { %v183_v56 = vpop.permute.xlu0 %182 }
 0x305   :  { %v190_v57 = vmul.f32 %v183_v56, %v60_v55  ;;  %v215_v62 = vrot.slane %v183_v56, %v425_v6 }
 0x307   :  { %v192_v59 = vsel %vm97_vm0, %v190_v57, 0.0 }
 0x308   :  { %v193_v60 = vrot.slane %v192_v59, 4  ;;  %v188_v61 = vpop.permute.xlu0 %187 }
 0x309   :  { %v191_v63 = vmul.f32 %v188_v61, %v61_v58  ;;  %v219_v0 = vrot.slane %v188_v61, %v425_v6 }
 0x30a   :  { %v194_v1 = vadd.f32 %v193_v60, %v192_v59 }
 0x30b   :  { %v199_v2 = vsel %vm97_vm0, %v191_v63, 0.0  ;;  %v220_v3 = vsel %vm118_vm1, %v219_v0, %v215_v62 }
 0x30c   :  { %v195_v4 = vrot.slane %v194_v1, 2  ;;  %v200_v5 = vrot.slane %v199_v2, 4  ;;  %222 = vst.msk [vmem:[#allocation9] sm:$0x3] %vm121_vm2, %v220_v3 }
 0x30d   :  { %342 = shalt.err (!%p339_p5)
}
 0x30e   :  { %242 = dma.vmem_to_hbm [thread:$0]  %s240_s2, 32, %s457_s4, [#allocation10]   ;;  %v196_v6 = vadd.f32 %v195_v4, %v194_v1  ;;  %v201_v7 = vadd.f32 %v200_v5, %v199_v2  ;;  %vm210_vm3 = vcmask 254976  }
 0x30f   :  { %s387_s8 = smov [#allocation8]  }
 0x310   :  { %v202_v8 = vrot.slane %v201_v7, 2  ;;  %v197_v9 = vrot.slane %v196_v6, 1  ;;  %s229_s9 = sshll.u32 %s387_s8, 4  ;;  %s230_s9 = int_to_ptr.vmem [resolvable:$true] %s229_s9 }
 0x311   :  { %s351_s10 = scalar_lea.vmem %s230_s9, 32  ;;  %p356_p7 = scmp.lt.s32.totalorder %s230_s9, %s230_s9 }
 0x312   :  { %v203_v10 = vadd.f32 %v202_v8, %v201_v7  ;;  %v198_v13 = vadd.f32 %v197_v9, %v196_v6  ;;  %p352_p6 = scmp.ne.s32.totalorder %s230_s9, %s351_s10  ;;  %p357_p8 = scmp.lt.s32.totalorder %s351_s10, %s351_s10 }
 0x314   :  { %v204_v11 = vrot.slane %v203_v10, 1  ;;  %p358_p9 = por %p357_p8, %p356_p7 }
 0x316   :  { %v205_v12 = vadd.f32 %v204_v11, %v203_v10  ;;  %p359_p10 = pnand %p358_p9, %p352_p6 }
 0x318   :  { %v208_v14 = vsel %vm118_vm1, %v205_v12, %v198_v13 }
 0x319   :  { %211 = vst.msk [vmem:[#allocation8] sm:$0x3] %vm210_vm3, %v208_v14 }
 0x31a   :  { %362 = shalt.err (!%p359_p10)
}
 0x31b   :  { %232 = dma.vmem_to_hbm [thread:$0]  %s230_s9, 32, %s456_s3, [#allocation4]  }
 0x31c   :  { %375 = dma.done.wait [#allocation4], 32  }
 0x31d   :  { %376 = vsyncadd [#allocation4], 4294967264 }
 0x31e   :  { %377 = dma.done.wait [#allocation10], 32  }
 0x31f   :  { %378 = vsyncadd [#allocation10], 4294967264 }
 0x320   :  { %249 = vsyncpa [#allocation3], 1 }
 0x321   :  { %250 = vsyncpa [#allocation6], 1 }
 0x322   :  { %251 = vsyncpa [#allocation4], 1 }
 0x323   :  { %252 = vsyncpa [#allocation10], 1 }

</bundles_post_ra>
